<compile_context>
chip_gen: v7x
topology: tpu7x:2x2x1
jax: 0.10.0
libtpu: 0.0.40
codegen_flags: <defaults>
</compile_context>

<pallas_src>
import functools

import jax
import jax.numpy as jnp
from jax.experimental import pallas as pl
from jax.experimental.pallas import tpu as pltpu

INPUT_SIZE = 45
HIDDEN_SIZE = 128
OUTPUT_SIZE = 2
K_PAD = 48                      # 45 padded up to a multiple of 8 (sublane-clean)
DEFAULT_BLOCK_B = 1024          # batch tile; fits comfortably in scoped VMEM on v5e/v6e/v7x


def bilstm_kernel(x_ref, wg_ref, bg_ref, wfc_f_ref, wfc_b_ref, bfc_ref, out_ref):
    """One batch tile: fused bidirectional single-step LSTM + fc head."""
    H = HIDDEN_SIZE
    x = x_ref[...]                                           # (TB, 48) f32

    # Single fused MXU issue for both directions; columns are [fwd i,g,o | bwd i,g,o].
    gates = jnp.dot(x, wg_ref[...], preferred_element_type=jnp.float32) + bg_ref[...]

    def direction(off):
        # Static, 128-aligned lane slices (no cross-lane movement).
        i_g = jax.nn.sigmoid(gates[:, off + 0 * H: off + 1 * H])
        g_g = jnp.tanh(gates[:, off + 1 * H: off + 2 * H])
        o_g = jax.nn.sigmoid(gates[:, off + 2 * H: off + 3 * H])
        return o_g * jnp.tanh(i_g * g_g)                     # (TB, H)

    h_fwd = direction(0)
    h_bwd = direction(3 * H)

    # concat(h_fwd, h_bwd) @ W_fc  ==  h_fwd @ W_fc[:H] + h_bwd @ W_fc[H:]  (no concatenate)
    logits = (jnp.dot(h_fwd, wfc_f_ref[...], preferred_element_type=jnp.float32)
              + jnp.dot(h_bwd, wfc_b_ref[...], preferred_element_type=jnp.float32)
              + bfc_ref[...])
    out_ref[...] = jax.nn.sigmoid(logits) * 44.0 + 1.0


def bilstm_forward(x, kernel_params, *, block_b=DEFAULT_BLOCK_B):
    """x: (B, 45) f32. kernel_params from pack_params(). Returns (B, 2)."""
    w_gates, b_gates, wfc_f, wfc_b, bfc = kernel_params
    B, D = x.shape
    K = w_gates.shape[0]                                     # 48

    # Pad contraction dim 45 -> 48 (zero rows in w_gates match, so result is exact).
    xp = jnp.pad(x, ((0, 0), (0, K - D)))

    # Batch tile: multiple of 8 sublanes, capped at block_b; pad batch to a full grid.
    tb = min(block_b, ((B + 7) // 8) * 8)
    Bp = ((B + tb - 1) // tb) * tb
    if Bp != B:
        xp = jnp.pad(xp, ((0, Bp - B), (0, 0)))

    resident = lambda shape: pl.BlockSpec(shape, lambda i: (0, 0))  # weights stay in VMEM

    out = pl.pallas_call(
        bilstm_kernel,
        out_shape=jax.ShapeDtypeStruct((Bp, OUTPUT_SIZE), jnp.float32),
        grid=(Bp // tb,),
        in_specs=[
            pl.BlockSpec((tb, K), lambda i: (i, 0)),          # x: tiled over batch
            resident(w_gates.shape),                          # (48, 6H)
            resident(b_gates.shape),                          # (1, 6H)
            resident(wfc_f.shape),                            # (H, O)
            resident(wfc_b.shape),                            # (H, O)
            resident(bfc.shape),                              # (1, O)
        ],
        out_specs=pl.BlockSpec((tb, OUTPUT_SIZE), lambda i: (i, 0)),
        compiler_params=pltpu.CompilerParams(
            dimension_semantics=("parallel",)),               # shard batch across TCs (v7x)
    )(xp, w_gates, b_gates, wfc_f, wfc_b, bfc)
    return out[:B]


# ---------------------------------------------------------------------------
# Parameter handling: PyTorch-layout params -> pruned / fused / padded kernel params.
# ---------------------------------------------------------------------------

def init_torch_params(key):
    """PyTorch-layout parameters with nn.LSTM / nn.Linear default uniform init."""
    H, D, O = HIDDEN_SIZE, INPUT_SIZE, OUTPUT_SIZE
    ks = jax.random.split(key, 10)
    u = lambda k, shape, b: jax.random.uniform(k, shape, jnp.float32, -b, b)
    b_lstm = 1.0 / jnp.sqrt(H)
    b_fc = 1.0 / jnp.sqrt(2 * H)
    return dict(
        w_ih_f=u(ks[0], (4 * H, D), b_lstm), b_ih_f=u(ks[1], (4 * H,), b_lstm),
        b_hh_f=u(ks[2], (4 * H,), b_lstm),
        w_ih_b=u(ks[3], (4 * H, D), b_lstm), b_ih_b=u(ks[4], (4 * H,), b_lstm),
        b_hh_b=u(ks[5], (4 * H,), b_lstm),
        w_fc=u(ks[6], (O, 2 * H), b_fc), b_fc=u(ks[7], (O,), b_fc),
    )


def pack_params(tp):
    """Prune the dead f gate (valid only because c0 == 0), fuse both directions,
    pad K 45 -> 48, pre-transpose, and split the fc weight into direction halves."""
    H, D = HIDDEN_SIZE, INPUT_SIZE

    def prune_dir(w_ih, b_ih, b_hh):
        w = w_ih.T                                            # (D, 4H), gate order i,f,g,o
        b = (b_ih + b_hh)[None, :]                            # (1, 4H)
        keep = lambda a: jnp.concatenate(
            [a[:, 0 * H:1 * H], a[:, 2 * H:3 * H], a[:, 3 * H:4 * H]], axis=1)
        return keep(w), keep(b)                               # (D, 3H), (1, 3H)

    wf, bf = prune_dir(tp["w_ih_f"], tp["b_ih_f"], tp["b_hh_f"])
    wb, bb = prune_dir(tp["w_ih_b"], tp["b_ih_b"], tp["b_hh_b"])

    w_gates = jnp.concatenate([wf, wb], axis=1)               # (45, 6H)
    w_gates = jnp.pad(w_gates, ((0, K_PAD - D), (0, 0)))      # (48, 6H)
    b_gates = jnp.concatenate([bf, bb], axis=1)               # (1, 6H)

    w_fc_t = tp["w_fc"].T                                     # (2H, O)
    wfc_f, wfc_b = w_fc_t[:H, :], w_fc_t[H:, :]               # (H, O) each
    bfc = tp["b_fc"][None, :]                                 # (1, O)
    return (w_gates, b_gates, wfc_f, wfc_b, bfc)


def reference_forward(x, tp):
    """Pure-JAX reference with full PyTorch LSTM math (f gate included, h0=c0=0)."""
    H = HIDDEN_SIZE

    def direction(w_ih, b_ih, b_hh):
        gates = x @ w_ih.T + b_ih + b_hh                      # (B, 4H)
        i_g = jax.nn.sigmoid(gates[:, 0 * H:1 * H])
        # f gate: sigmoid(f) * c0 == 0
        g_g = jnp.tanh(gates[:, 2 * H:3 * H])
        o_g = jax.nn.sigmoid(gates[:, 3 * H:4 * H])
        return o_g * jnp.tanh(i_g * g_g)

    h = jnp.concatenate([direction(tp["w_ih_f"], tp["b_ih_f"], tp["b_hh_f"]),
                         direction(tp["w_ih_b"], tp["b_ih_b"], tp["b_hh_b"])], axis=-1)
    return jax.nn.sigmoid(h @ tp["w_fc"].T + tp["b_fc"]) * 44.0 + 1.0


if __name__ == "__main__":
    key = jax.random.PRNGKey(0)
    k_param, k_x1, k_x2 = jax.random.split(key, 3)

    torch_params = init_torch_params(k_param)
    kernel_params = pack_params(torch_params)

    fwd = jax.jit(functools.partial(bilstm_forward, block_b=DEFAULT_BLOCK_B))

    # Small batch (single grid step).
    B = 8
    x = jax.random.normal(k_x1, (B, INPUT_SIZE), jnp.float32)
    out = jax.block_until_ready(fwd(x, kernel_params))
    ref = reference_forward(x, torch_params)
    assert out.shape == (B, OUTPUT_SIZE)
    assert jnp.allclose(out, ref, atol=1e-5, rtol=1e-5)
    assert bool(jnp.all(out >= 1.0)) and bool(jnp.all(out <= 45.0))

    # Batch not a multiple of 8: exercises batch-padding path.
    B2 = 10
    x2 = jax.random.normal(k_x2, (B2, INPUT_SIZE), jnp.float32)
    out2 = jax.block_until_ready(fwd(x2, kernel_params))
    ref2 = reference_forward(x2, torch_params)
    assert out2.shape == (B2, OUTPUT_SIZE)
    assert jnp.allclose(out2, ref2, atol=1e-5, rtol=1e-5)

    print("KERNEL_OK")
</pallas_src>

<mosaic_0001>
module attributes {stable_mosaic.version = 11 : i64} {
  func.func @bilstm_kernel(%arg0: i32, %arg1: memref<8x48xf32, #tpu.memory_space<vmem>>, %arg2: memref<48x768xf32, #tpu.memory_space<vmem>>, %arg3: memref<1x768xf32, #tpu.memory_space<vmem>>, %arg4: memref<128x2xf32, #tpu.memory_space<vmem>>, %arg5: memref<128x2xf32, #tpu.memory_space<vmem>>, %arg6: memref<1x2xf32, #tpu.memory_space<vmem>>, %arg7: memref<8x2xf32, #tpu.memory_space<vmem>>) attributes {dimension_semantics = [#tpu.dimension_semantics<parallel>], iteration_bounds = array<i64: 1>, scalar_prefetch = 0 : i64, scratch_operands = 0 : i64, tpu.core_type = #tpu.core_type<tc>, window_params = [{transform_indices = @transform_0, window_bounds = array<i64: 8, 48>}, {pipeline_mode = #tpu.pipeline_mode<synchronous>, transform_indices = @transform_1, window_bounds = array<i64: 48, 768>}, {pipeline_mode = #tpu.pipeline_mode<synchronous>, transform_indices = @transform_2, window_bounds = array<i64: 1, 768>}, {pipeline_mode = #tpu.pipeline_mode<synchronous>, transform_indices = @transform_3, window_bounds = array<i64: 128, 2>}, {pipeline_mode = #tpu.pipeline_mode<synchronous>, transform_indices = @transform_4, window_bounds = array<i64: 128, 2>}, {pipeline_mode = #tpu.pipeline_mode<synchronous>, transform_indices = @transform_5, window_bounds = array<i64: 1, 2>}, {transform_indices = @transform_6, window_bounds = array<i64: 8, 2>}]} {
    %c0 = arith.constant 0 : index
    %c0_0 = arith.constant 0 : index
    %0 = vector.load %arg1[%c0, %c0_0] : memref<8x48xf32, #tpu.memory_space<vmem>>, vector<8x48xf32>
    %c0_1 = arith.constant 0 : index
    %c0_2 = arith.constant 0 : index
    %1 = vector.load %arg2[%c0_1, %c0_2] : memref<48x768xf32, #tpu.memory_space<vmem>>, vector<48x768xf32>
    %cst = arith.constant dense<0.000000e+00> : vector<8x768xf32>
    %2 = tpu.matmul %0, %1, %cst {dimension_numbers = #tpu.dot_dimension_numbers<[1], [0], [0], [1], [0, 0, 1, 1], [], []>} : vector<8x48xf32>, vector<48x768xf32>, vector<8x768xf32> -> vector<8x768xf32>
    %c0_3 = arith.constant 0 : index
    %c0_4 = arith.constant 0 : index
    %3 = vector.load %arg3[%c0_3, %c0_4] : memref<1x768xf32, #tpu.memory_space<vmem>>, vector<1x768xf32>
    %4 = vector.broadcast %3 : vector<1x768xf32> to vector<8x768xf32>
    %5 = arith.addf %2, %4 : vector<8x768xf32>
    %6 = vector.extract_strided_slice %5 {offsets = [0, 0], sizes = [8, 128], strides = [1, 1]} : vector<8x768xf32> to vector<8x128xf32>
    %7 = arith.negf %6 : vector<8x128xf32>
    %8 = math.exp %7 : vector<8x128xf32>
    %cst_5 = arith.constant 1.000000e+00 : f32
    %9 = vector.broadcast %cst_5 : f32 to vector<8x128xf32>
    %10 = arith.addf %9, %8 : vector<8x128xf32>
    %11 = arith.divf %9, %10 : vector<8x128xf32>
    %12 = vector.extract_strided_slice %5 {offsets = [0, 128], sizes = [8, 128], strides = [1, 1]} : vector<8x768xf32> to vector<8x128xf32>
    %13 = math.tanh %12 : vector<8x128xf32>
    %14 = vector.extract_strided_slice %5 {offsets = [0, 256], sizes = [8, 128], strides = [1, 1]} : vector<8x768xf32> to vector<8x128xf32>
    %15 = arith.negf %14 : vector<8x128xf32>
    %16 = math.exp %15 : vector<8x128xf32>
    %cst_6 = arith.constant 1.000000e+00 : f32
    %17 = vector.broadcast %cst_6 : f32 to vector<8x128xf32>
    %18 = arith.addf %17, %16 : vector<8x128xf32>
    %19 = arith.divf %17, %18 : vector<8x128xf32>
    %20 = arith.mulf %11, %13 : vector<8x128xf32>
    %21 = math.tanh %20 : vector<8x128xf32>
    %22 = arith.mulf %19, %21 : vector<8x128xf32>
    %23 = vector.extract_strided_slice %5 {offsets = [0, 384], sizes = [8, 128], strides = [1, 1]} : vector<8x768xf32> to vector<8x128xf32>
    %24 = arith.negf %23 : vector<8x128xf32>
    %25 = math.exp %24 : vector<8x128xf32>
    %cst_7 = arith.constant 1.000000e+00 : f32
    %26 = vector.broadcast %cst_7 : f32 to vector<8x128xf32>
    %27 = arith.addf %26, %25 : vector<8x128xf32>
    %28 = arith.divf %26, %27 : vector<8x128xf32>
    %29 = vector.extract_strided_slice %5 {offsets = [0, 512], sizes = [8, 128], strides = [1, 1]} : vector<8x768xf32> to vector<8x128xf32>
    %30 = math.tanh %29 : vector<8x128xf32>
    %31 = vector.extract_strided_slice %5 {offsets = [0, 640], sizes = [8, 128], strides = [1, 1]} : vector<8x768xf32> to vector<8x128xf32>
    %32 = arith.negf %31 : vector<8x128xf32>
    %33 = math.exp %32 : vector<8x128xf32>
    %cst_8 = arith.constant 1.000000e+00 : f32
    %34 = vector.broadcast %cst_8 : f32 to vector<8x128xf32>
    %35 = arith.addf %34, %33 : vector<8x128xf32>
    %36 = arith.divf %34, %35 : vector<8x128xf32>
    %37 = arith.mulf %28, %30 : vector<8x128xf32>
    %38 = math.tanh %37 : vector<8x128xf32>
    %39 = arith.mulf %36, %38 : vector<8x128xf32>
    %c0_9 = arith.constant 0 : index
    %c0_10 = arith.constant 0 : index
    %40 = vector.load %arg4[%c0_9, %c0_10] : memref<128x2xf32, #tpu.memory_space<vmem>>, vector<128x2xf32>
    %cst_11 = arith.constant dense<0.000000e+00> : vector<8x2xf32>
    %41 = tpu.matmul %22, %40, %cst_11 {dimension_numbers = #tpu.dot_dimension_numbers<[1], [0], [0], [1], [0, 0, 1, 1], [], []>} : vector<8x128xf32>, vector<128x2xf32>, vector<8x2xf32> -> vector<8x2xf32>
    %c0_12 = arith.constant 0 : index
    %c0_13 = arith.constant 0 : index
    %42 = vector.load %arg5[%c0_12, %c0_13] : memref<128x2xf32, #tpu.memory_space<vmem>>, vector<128x2xf32>
    %cst_14 = arith.constant dense<0.000000e+00> : vector<8x2xf32>
    %43 = tpu.matmul %39, %42, %cst_14 {dimension_numbers = #tpu.dot_dimension_numbers<[1], [0], [0], [1], [0, 0, 1, 1], [], []>} : vector<8x128xf32>, vector<128x2xf32>, vector<8x2xf32> -> vector<8x2xf32>
    %44 = arith.addf %41, %43 : vector<8x2xf32>
    %c0_15 = arith.constant 0 : index
    %c0_16 = arith.constant 0 : index
    %45 = vector.load %arg6[%c0_15, %c0_16] : memref<1x2xf32, #tpu.memory_space<vmem>>, vector<1x2xf32>
    %46 = vector.broadcast %45 : vector<1x2xf32> to vector<8x2xf32>
    %47 = arith.addf %44, %46 : vector<8x2xf32>
    %48 = arith.negf %47 : vector<8x2xf32>
    %49 = math.exp %48 : vector<8x2xf32>
    %cst_17 = arith.constant 1.000000e+00 : f32
    %50 = vector.broadcast %cst_17 : f32 to vector<8x2xf32>
    %51 = arith.addf %50, %49 : vector<8x2xf32>
    %52 = arith.divf %50, %51 : vector<8x2xf32>
    %cst_18 = arith.constant 4.400000e+01 : f32
    %53 = vector.broadcast %cst_18 : f32 to vector<8x2xf32>
    %54 = arith.mulf %52, %53 : vector<8x2xf32>
    %cst_19 = arith.constant 1.000000e+00 : f32
    %55 = vector.broadcast %cst_19 : f32 to vector<8x2xf32>
    %56 = arith.addf %54, %55 : vector<8x2xf32>
    %c0_20 = arith.constant 0 : index
    %c0_21 = arith.constant 0 : index
    %57 = vector.load %arg7[%c0_20, %c0_21] : memref<8x2xf32, #tpu.memory_space<vmem>>, vector<8x2xf32>
    tpu.vector_store %arg7[%c0_20, %c0_21], %56 {strides = array<i32>} : memref<8x2xf32, #tpu.memory_space<vmem>>, vector<8x2xf32>,
    return
  }
  func.func @transform_0(%arg0: i32) -> (i32, i32) {
    %c0_i32 = arith.constant 0 : i32
    %c0_i32_0 = arith.constant 0 : i32
    return %arg0, %c0_i32 : i32, i32
  }
  func.func @transform_1(%arg0: i32) -> (i32, i32) {
    %c0_i32 = arith.constant 0 : i32
    %c0_i32_0 = arith.constant 0 : i32
    %c0_i32_1 = arith.constant 0 : i32
    return %c0_i32, %c0_i32_0 : i32, i32
  }
  func.func @transform_2(%arg0: i32) -> (i32, i32) {
    %c0_i32 = arith.constant 0 : i32
    %c0_i32_0 = arith.constant 0 : i32
    %c0_i32_1 = arith.constant 0 : i32
    return %c0_i32, %c0_i32_0 : i32, i32
  }
  func.func @transform_3(%arg0: i32) -> (i32, i32) {
    %c0_i32 = arith.constant 0 : i32
    %c0_i32_0 = arith.constant 0 : i32
    %c0_i32_1 = arith.constant 0 : i32
    return %c0_i32, %c0_i32_0 : i32, i32
  }
  func.func @transform_4(%arg0: i32) -> (i32, i32) {
    %c0_i32 = arith.constant 0 : i32
    %c0_i32_0 = arith.constant 0 : i32
    %c0_i32_1 = arith.constant 0 : i32
    return %c0_i32, %c0_i32_0 : i32, i32
  }
  func.func @transform_5(%arg0: i32) -> (i32, i32) {
    %c0_i32 = arith.constant 0 : i32
    %c0_i32_0 = arith.constant 0 : i32
    %c0_i32_1 = arith.constant 0 : i32
    return %c0_i32, %c0_i32_0 : i32, i32
  }
  func.func @transform_6(%arg0: i32) -> (i32, i32) {
    %c0_i32 = arith.constant 0 : i32
    %c0_i32_0 = arith.constant 0 : i32
    return %arg0, %c0_i32 : i32, i32
  }
}

</mosaic_0001>

<bundles_post_ra>
// kernel: bilstm_forward.1
= control target key start
LH: loop header
LB: loop body
LE: loop exit
PB: predicated region body
PF: predicated region fallthrough
CT: control target
= control target key end

     0   :  { %11 = vsyncpa [#allocation3], 0  ;;  %s805_s21 = smov [#allocation2]   ;;  %s990_s0 = inlined_call_operand.vmem [shape: f32[8,48], index: 0, kind: input, shape index: {}]   ;;  %s991_s1 = inlined_call_operand.hbm [shape: f32[48,768], index: 1, kind: input, shape index: {}]   ;;  %s992_s2 = inlined_call_operand.vmem [shape: f32[1,768], index: 2, kind: input, shape index: {}]   ;;  %s993_s3 = inlined_call_operand.vmem [shape: f32[128,2], index: 3, kind: input, shape index: {}]   ;;  %s994_s4 = inlined_call_operand.vmem [shape: f32[128,2], index: 4, kind: input, shape index: {}]   ;;  %s995_s5 = inlined_call_operand.vmem [shape: f32[1,2], index: 5, kind: input, shape index: {}]   ;;  %s996_s6 = inlined_call_operand.vmem [shape: f32[8,2], index: 6, kind: output, shape index: {}]  }
   0x1   :  { %s19_s22 = sshll.u32 %s805_s21, 4  ;;  %s781_s25 = scalar_lea.hbm %s991_s1, 4608  ;;  %s20_s22 = int_to_ptr.vmem [resolvable:$true] %s19_s22 }
   0x2   :  { %p782_p0 = scmp.ne.s32.totalorder %s991_s1, %s781_s25  ;;  %p785_p1 = scmp.lt.u32.totalorder %s781_s25, %s991_s1 }
   0x4   :  { %p787_p2 = pnand %p785_p1, %p782_p0 }
   0x6   :  { %790 = shalt.err (!%p787_p2)
}
   0x7   :  { %s791_s30 = scalar_lea.vmem %s20_s22, 4608  ;;  %p796_p4 = scmp.lt.s32.totalorder %s20_s22, %s20_s22 }
   0x8   :  { %p792_p3 = scmp.ne.s32.totalorder %s20_s22, %s791_s30  ;;  %p797_p5 = scmp.lt.s32.totalorder %s791_s30, %s791_s30 }
   0xa   :  { %p798_p6 = por %p797_p5, %p796_p4 }
   0xc   :  { %p799_p7 = pnand %p798_p6, %p792_p3 }
   0xe   :  { %802 = shalt.err (!%p799_p7)
}
   0xf   :  { %s806_s7 = smov 768   ;;  %s807_s8 = smov 48  }
  0x10   :  { %25 = dma.hbm_to_vmem [thread:$0]  %s991_s1, 4608, %s20_s22, [#allocation3], %s806_s7, %s806_s7, %s807_s8  }
  0x11   :  { %803 = dma.done.wait [#allocation3], 4608  }
  0x12   :  { %804 = vsyncadd [#allocation3], 4294962688  ;;  %v808_v0 = vmov 0.0   ;;  %v39_v1 = vld [vmem:[#allocation2 + $0x8] sm:$0xff]  ;;  %v45_v2 = vld [vmem:[#allocation2 + $0x38] sm:$0xff]  ;;  %vm106_vm0 = vcmask 392192  }
  0x13   :  { %174 = vmatprep.mubr.f32.mxu0 %v808_v0  ;;  %245 = vmatprep.mubr.f32.mxu1 %v808_v0  ;;  %v41_v3 = vld [vmem:[#allocation2 + $0x18] sm:$0xff]  ;;  %v663_v4 = vpack.c.bf16 %v45_v2, %v39_v1  ;;  %v47_v5 = vld [vmem:[#allocation2 + $0x48] sm:$0xff]  ;;  %v38_v6 = vld [vmem:[#allocation2] sm:$0xff]  ;;  %v809_v56 = vmov 0.0|0.0   ;;  %vm810_vm1 = vmmov 0   ;;  %vm543_vm2 = vcmask 15360  }
  0x14   :  { %v44_v7 = vld [vmem:[#allocation2 + $0x30] sm:$0xff]  ;;  %v675_v8 = vpack.c.bf16 %v47_v5, %v41_v3  ;;  %v46_v11 = vld [vmem:[#allocation2 + $0x40] sm:$0xff]  ;;  %v51_v12 = vld [vmem:[#allocation2 + $0x68] sm:$0xff] }
  0x15   :  { %v665_v9 = vpack.c.bf16 %v44_v7, %v38_v6  ;;  %v40_v10 = vld [vmem:[#allocation2 + $0x10] sm:$0xff]  ;;  %664 = vmatprep.subr.bf16.mxu0 %v663_v4  ;;  %v57_v14 = vld [vmem:[#allocation2 + $0x98] sm:$0xff]  ;;  %v59_v16 = vld [vmem:[#allocation2 + $0xa8] sm:$0xff] }
  0x16   :  { %v677_v13 = vpack.c.bf16 %v46_v11, %v40_v10  ;;  %v53_v15 = vld [vmem:[#allocation2 + $0x78] sm:$0xff]  ;;  %676 = vmatprep.subr.bf16.mxu1 %v675_v8  ;;  %v667_v17 = vpack.c.bf16 %v57_v14, %v51_v12  ;;  %v50_v19 = vld [vmem:[#allocation2 + $0x60] sm:$0xff]  ;;  %v56_v20 = vld [vmem:[#allocation2 + $0x90] sm:$0xff] }
  0x17   :  { %666 = vmatpush1.bf16.msra.mxu0 %v665_v9  ;;  %v679_v18 = vpack.c.bf16 %v59_v16, %v53_v15  ;;  %v52_v21 = vld [vmem:[#allocation2 + $0x70] sm:$0xff]  ;;  %v669_v22 = vpack.c.bf16 %v56_v20, %v50_v19  ;;  %v58_v23 = vld [vmem:[#allocation2 + $0xa0] sm:$0xff]  ;;  %v63_v24 = vld [vmem:[#allocation2 + $0xc8] sm:$0xff] }
  0x18   :  { %678 = vmatpush1.bf16.msra.mxu1 %v677_v13  ;;  %v69_v25 = vld [vmem:[#allocation2 + $0xf8] sm:$0xff]  ;;  %668 = vmatprep.subr.bf16.mxu0 %v667_v17  ;;  %v681_v26 = vpack.c.bf16 %v58_v23, %v52_v21  ;;  %v71_v29 = vld [vmem:[#allocation2 + $0x108] sm:$0xff]  ;;  %v62_v30 = vld [vmem:[#allocation2 + $0xc0] sm:$0xff] }
  0x19   :  { %680 = vmatprep.subr.bf16.mxu1 %v679_v18  ;;  %v671_v27 = vpack.c.bf16 %v69_v25, %v63_v24  ;;  %v65_v28 = vld [vmem:[#allocation2 + $0xd8] sm:$0xff]  ;;  %v68_v32 = vld [vmem:[#allocation2 + $0xf0] sm:$0xff]  ;;  %v70_v34 = vld [vmem:[#allocation2 + $0x100] sm:$0xff] }
  0x1a   :  { %v683_v31 = vpack.c.bf16 %v71_v29, %v65_v28  ;;  %v64_v33 = vld [vmem:[#allocation2 + $0xd0] sm:$0xff]  ;;  %v673_v35 = vpack.c.bf16 %v68_v32, %v62_v30  ;;  %v43_v36 = vld [vmem:[#allocation2 + $0x28] sm:$0xff]  ;;  %v49_v37 = vld [vmem:[#allocation2 + $0x58] sm:$0xff] }
  0x1b   :  { %670 = vmatpush1.bf16.msra.mxu0 %v669_v22  ;;  %v685_v38 = vpack.c.bf16 %v70_v34, %v64_v33  ;;  %v687_v39 = vpack.c.bf16 %v49_v37, %v43_v36  ;;  %v42_v40 = vld [vmem:[#allocation2 + $0x20] sm:$0xff]  ;;  %v48_v41 = vld [vmem:[#allocation2 + $0x50] sm:$0xff]  ;;  %v55_v42 = vld [vmem:[#allocation2 + $0x88] sm:$0xff] }
  0x1c   :  { %682 = vmatpush1.bf16.msra.mxu1 %v681_v26  ;;  %672 = vmatprep.subr.bf16.mxu0 %v671_v27  ;;  %v61_v43 = vld [vmem:[#allocation2 + $0xb8] sm:$0xff]  ;;  %v689_v45 = vpack.c.bf16 %v48_v41, %v42_v40  ;;  %v54_v47 = vld [vmem:[#allocation2 + $0x80] sm:$0xff]  ;;  %v60_v48 = vld [vmem:[#allocation2 + $0xb0] sm:$0xff]  ;;  %v76_v41 = vlaneseq }
  0x1d   :  { %684 = vmatprep.subr.bf16.mxu1 %v683_v31  ;;  %v37_v44 = vld [vmem:[%s990_s0] sm:$0xff]  ;;  %v691_v46 = vpack.c.bf16 %v61_v43, %v55_v42  ;;  %v67_v49 = vld [vmem:[#allocation2 + $0xe8] sm:$0xff]  ;;  %v693_v51 = vpack.c.bf16 %v60_v48, %v54_v47  ;;  %v66_v53 = vld [vmem:[#allocation2 + $0xe0] sm:$0xff] }
  0x1e   :  { %v73_v50 = vld [vmem:[#allocation2 + $0x118] sm:$0xff]  ;;  %v72_v54 = vld [vmem:[#allocation2 + $0x110] sm:$0xff]  ;;  %v356_v58 = vld [vmem:[%s993_s3 + $0x8] sm:$0xff]  ;;  %v77_v42 = vshrl.u32 %v76_v41, 7 }
  0x1f   :  { %674 = vmatpush1.bf16.msra.mxu0 %v673_v35  ;;  %v695_v52 = vpack.c.bf16 %v73_v50, %v67_v49  ;;  %v697_v55 = vpack.c.bf16 %v72_v54, %v66_v53  ;;  %v355_v57 = vld [vmem:[%s993_s3] sm:$0xff]  ;;  %v372_v61 = vld [vmem:[%s994_s4 + $0x8] sm:$0xff]  ;;  %v357_v63 = vld [vmem:[%s993_s3 + $0x10] sm:$0xff] }
  0x20   :  { %686 = vmatpush1.bf16.msra.mxu1 %v685_v38  ;;  %688 = vmatprep.subr.bf16.mxu0 %v687_v39  ;;  %v724_v59 = vpack.c.bf16 %v356_v58, %v355_v57  ;;  %v371_v60 = vld [vmem:[%s994_s4] sm:$0xff]  ;;  %v358_v1 = vld [vmem:[%s993_s3 + $0x18] sm:$0xff]  ;;  %v373_v3 = vld [vmem:[%s994_s4 + $0x10] sm:$0xff]  ;;  %v78_v43 = vsub.s32 0, %v77_v42  ;;  %v86_v47 = vsub.s32 2, %v77_v42  ;;  %v82_v58 = vsub.s32 1, %v77_v42 }
  0x21   :  { %699 = vmatprep.subr.bf16.mxu1 %v809_v56  ;;  %v700_v62 = vpack.c.bf16 %v372_v61, %v371_v60  ;;  %v727_v2 = vpack.c.bf16 %v358_v1, %v357_v63  ;;  %v374_v4 = vld [vmem:[%s994_s4 + $0x18] sm:$0xff]  ;;  %v359_v6 = vld [vmem:[%s993_s3 + $0x20] sm:$0xff]  ;;  %v360_v7 = vld [vmem:[%s993_s3 + $0x28] sm:$0xff]  ;;  %v98_v60 = vsub.s32 5, %v77_v42  ;;  %v94_v61 = vsub.s32 4, %v77_v42 }
  0x22   :  { %550 = vmatmul.mubr.msk.f32.vlgmr.msra.gmra.mrb[0].mxu0 %vm106_vm0, %v37_v44  ;;  %v703_v5 = vpack.c.bf16 %v374_v4, %v373_v3  ;;  %v730_v8 = vpack.c.bf16 %v360_v7, %v359_v6  ;;  %v375_v9 = vld [vmem:[%s994_s4 + $0x20] sm:$0xff]  ;;  %v376_v10 = vld [vmem:[%s994_s4 + $0x28] sm:$0xff]  ;;  %v361_v12 = vld [vmem:[%s993_s3 + $0x30] sm:$0xff] }
  0x23   :  { %551 = vmatmul.mubr.msk.f32.vlgmr.msra.gmra.mrb[0].mxu1 %vm106_vm0, %v37_v44  ;;  %690 = vmatpush1.bf16.msra.mxu0 %v689_v45  ;;  %v706_v11 = vpack.c.bf16 %v376_v10, %v375_v9  ;;  %v362_v13 = vld [vmem:[%s993_s3 + $0x38] sm:$0xff]  ;;  %v377_v15 = vld [vmem:[%s994_s4 + $0x30] sm:$0xff]  ;;  %v363_v18 = vld [vmem:[%s993_s3 + $0x40] sm:$0xff]  ;;  %v90_v45 = vsub.s32 3, %v77_v42 }
  0x24   :  { %692 = vmatprep.subr.bf16.mxu0 %v691_v46  ;;  %316 = vmatprep.mubr.f32.mxu0 %v808_v0  ;;  %v733_v14 = vpack.c.bf16 %v362_v13, %v361_v12  ;;  %v378_v16 = vld [vmem:[%s994_s4 + $0x38] sm:$0xff]  ;;  %v364_v19 = vld [vmem:[%s993_s3 + $0x48] sm:$0xff]  ;;  %v379_v21 = vld [vmem:[%s994_s4 + $0x40] sm:$0xff] }
  0x25   :  { %701 = vmatpush3.bf16.msra.mxu1 %v700_v62  ;;  %v709_v17 = vpack.c.bf16 %v378_v16, %v377_v15  ;;  %v736_v20 = vpack.c.bf16 %v364_v19, %v363_v18  ;;  %v380_v22 = vld [vmem:[%s994_s4 + $0x48] sm:$0xff]  ;;  %v365_v24 = vld [vmem:[%s993_s3 + $0x50] sm:$0xff]  ;;  %v366_v25 = vld [vmem:[%s993_s3 + $0x58] sm:$0xff]  ;;  %625 = vmatprep.mubr.msk.f32.mxu1 %vm810_vm1, %v808_v0 }
  0x26   :  { %702 = vmatprep.subr.bf16.mxu1 %v809_v56  ;;  %v712_v23 = vpack.c.bf16 %v380_v22, %v379_v21  ;;  %v739_v26 = vpack.c.bf16 %v366_v25, %v365_v24  ;;  %v381_v27 = vld [vmem:[%s994_s4 + $0x50] sm:$0xff]  ;;  %v382_v28 = vld [vmem:[%s994_s4 + $0x58] sm:$0xff]  ;;  %v367_v29 = vld [vmem:[%s993_s3 + $0x60] sm:$0xff] }
  0x27   :  { %694 = vmatpush1.bf16.msra.mxu0 %v693_v51  ;;  %v715_v30 = vpack.c.bf16 %v382_v28, %v381_v27  ;;  %v368_v31 = vld [vmem:[%s993_s3 + $0x68] sm:$0xff]  ;;  %v383_v32 = vld [vmem:[%s994_s4 + $0x60] sm:$0xff]  ;;  %v369_v36 = vld [vmem:[%s993_s3 + $0x70] sm:$0xff] }
  0x28   :  { %696 = vmatprep.subr.bf16.mxu0 %v695_v52  ;;  %v384_v33 = vld [vmem:[%s994_s4 + $0x68] sm:$0xff]  ;;  %v742_v34 = vpack.c.bf16 %v368_v31, %v367_v29  ;;  %v370_v37 = vld [vmem:[%s993_s3 + $0x78] sm:$0xff] }
  0x29   :  { %704 = vmatpush3.bf16.msra.mxu1 %v703_v5  ;;  %v718_v35 = vpack.c.bf16 %v384_v33, %v383_v32  ;;  %v386_v38 = vld [vmem:[%s994_s4 + $0x78] sm:$0xff]  ;;  %v745_v39 = vpack.c.bf16 %v370_v37, %v369_v36  ;;  %v557_v32 = vld [vmem:[%s995_s5] ss:$0 sm:$0xff] }
  0x2a   :  { %705 = vmatprep.subr.bf16.mxu1 %v809_v56 }
  0x2b   :  { %698 = vmatpush1.bf16.msra.mxu0 %v697_v55 }
  0x2c   :  { %723 = vmatprep.subr.bf16.mxu0 %v809_v56 }
  0x2d   :  { %707 = vmatpush3.bf16.msra.mxu1 %v706_v11 }
  0x2e   :  { %552 = vmatmul.mubr.msk.f32.vlgmr.msra.gmra.mrb[2].mxu0 %vm106_vm0, %v37_v44  ;;  %708 = vmatprep.subr.bf16.mxu1 %v809_v56  ;;  %v74_v44 = vld [vmem:[%s992_s2] sm:$0x3f] }
  0x2f   :  { %725 = vmatpush3.bf16.msra.mxu0 %v724_v59  ;;  %660 = vmatprep.mubr.msk.f32.mxu0 %vm810_vm1, %v808_v0  ;;  %v385_v0 = vld [vmem:[%s994_s4 + $0x70] sm:$0xff]  ;;  %v79_v46 = vrot.slane %v74_v44, %v78_v43  ;;  %v91_v48 = vrot.slane %v74_v44, %v90_v45  ;;  %v87_v51 = vrot.slane %v74_v44, %v86_v47 }
  0x30   :  { %726 = vmatprep.subr.bf16.mxu0 %v809_v56  ;;  %v721_v40 = vpack.c.bf16 %v386_v38, %v385_v0  ;;  %v83_v63 = vrot.slane %v74_v44, %v82_v58  ;;  %v99_v1 = vrot.slane %v74_v44, %v98_v60 }
  0x31   :  { %710 = vmatpush3.bf16.msra.mxu1 %v709_v17 }
  0x32   :  { %711 = vmatprep.subr.bf16.mxu1 %v809_v56 }
  0x33   :  { %728 = vmatpush3.bf16.msra.mxu0 %v727_v2  ;;  %v95_v2 = vrot.slane %v74_v44, %v94_v61 }
  0x34   :  { %729 = vmatprep.subr.bf16.mxu0 %v809_v56 }
  0x35   :  { %713 = vmatpush3.bf16.msra.mxu1 %v712_v23 }
  0x36   :  { %714 = vmatprep.subr.bf16.mxu1 %v809_v56 }
  0x37   :  { %731 = vmatpush3.bf16.msra.mxu0 %v730_v8 }
  0x38   :  { %732 = vmatprep.subr.bf16.mxu0 %v809_v56 }
  0x39   :  { %716 = vmatpush3.bf16.msra.mxu1 %v715_v30 }
  0x3a   :  { %717 = vmatprep.subr.bf16.mxu1 %v809_v56 }
  0x3b   :  { %734 = vmatpush3.bf16.msra.mxu0 %v733_v14 }
  0x3c   :  { %735 = vmatprep.subr.bf16.mxu0 %v809_v56 }
  0x3d   :  { %719 = vmatpush3.bf16.msra.mxu1 %v718_v35 }
  0x3e   :  { %720 = vmatprep.subr.bf16.mxu1 %v809_v56 }
  0x3f   :  { %737 = vmatpush3.bf16.msra.mxu0 %v736_v20 }
  0x40   :  { %738 = vmatprep.subr.bf16.mxu0 %v809_v56 }
  0x41   :  { %722 = vmatpush3.bf16.msra.mxu1 %v721_v40 }
  0x43   :  { %740 = vmatpush3.bf16.msra.mxu0 %v739_v26 }
  0x44   :  { %741 = vmatprep.subr.bf16.mxu0 %v809_v56 }
  0x47   :  { %743 = vmatpush3.bf16.msra.mxu0 %v742_v34 }
  0x48   :  { %744 = vmatprep.subr.bf16.mxu0 %v809_v56 }
  0x4b   :  { %746 = vmatpush3.bf16.msra.mxu0 %v745_v39 }
  0xf5   :  { %v176_v49 = vpop.f32.mrb[0].mxu0 }
  0xf6   :  { %v177_v50 = vadd.f32 %v176_v49, %v79_v46  ;;  %v247_v52 = vpop.f32.mrb[0].mxu1  ;;  %v178_v53 = vpop.f32.mrb[1].mxu0 }
  0xf7   :  { %v249_v54 = vpop.f32.mrb[1].mxu1  ;;  %v248_v57 = vadd.f32 %v247_v52, %v87_v51  ;;  %v179_v4 = vadd.f32 %v178_v53, %v83_v63 }
  0xf8   :  { %v553_v55 = vmul.f32 -1.442695, %v177_v50  ;;  %v250_v56 = vadd.f32 %v249_v54, %v91_v48 }
  0xf9   :  { %v554_v62 = vmul.f32 -1.442695, %v248_v57 }
  0xfa   :  { %753 = vpow2.f32 %v553_v55  ;;  %v555_v59 = vmul.f32 -1.442695, %v250_v56 }
  0xfc   :  { %755 = vpow2.f32 %v555_v59 }
  0xfd   :  { %757 = vpow2.f32 %v554_v62 }
  0xfe   :  { %759 = vtanh.f32 %v179_v4 }
 0x101   :  { %v318_v3 = vpop.f32.mrb[2].mxu0 }
 0x102   :  { %v320_v5 = vpop.f32.mrb[3].mxu0  ;;  %v319_v8 = vadd.f32 %v318_v3, %v95_v2 }
 0x103   :  { %v321_v6 = vadd.f32 %v320_v5, %v99_v1 }
 0x104   :  { %v754_v7 = vpop.eup %753 }
 0x105   :  { %v326_v9 = vadd.f32 1.0, %v754_v7  ;;  %v556_v11 = vmul.f32 -1.442695, %v321_v6 }
 0x106   :  { %v756_v10 = vpop.eup %755 }
 0x107   :  { %761 = vrcp.f32 %v326_v9  ;;  %v342_v12 = vadd.f32 1.0, %v756_v10  ;;  %v758_v13 = vpop.eup %757 }
 0x108   :  { %763 = vtanh.f32 %v319_v8  ;;  %v333_v14 = vadd.f32 1.0, %v758_v13  ;;  %v760_v15 = vpop.eup %759 }
 0x109   :  { %765 = vrcp.f32 %v342_v12 }
 0x10a   :  { %767 = vpow2.f32 %v556_v11 }
 0x10b   :  { %769 = vrcp.f32 %v333_v14 }
 0x111   :  { %v762_v16 = vpop.eup %761 }
 0x112   :  { %v764_v17 = vpop.eup %763  ;;  %v336_v18 = vmul.f32 %v762_v16, %v760_v15 }
 0x113   :  { %v766_v19 = vpop.eup %765 }
 0x114   :  { %v768_v20 = vpop.eup %767  ;;  %771 = vtanh.f32 %v336_v18  ;;  %v352_v21 = vmul.f32 %v766_v19, %v764_v17 }
 0x115   :  { %v349_v22 = vadd.f32 1.0, %v768_v20  ;;  %v770_v23 = vpop.eup %769 }
 0x116   :  { %773 = vtanh.f32 %v352_v21 }
 0x117   :  { %775 = vrcp.f32 %v349_v22 }
 0x11e   :  { %v772_v24 = vpop.eup %771 }
 0x11f   :  { %v338_v25 = vmul.f32 %v772_v24, %v770_v23 }
 0x120   :  { %v774_v26 = vpop.eup %773 }
 0x121   :  { %v776_v27 = vpop.eup %775  ;;  %661 = vmatmul.mubr.f32.vlgmr.msra.gmra.mrb[4].mxu0 %v338_v25 }
 0x122   :  { %v354_v28 = vmul.f32 %v776_v27, %v774_v26 }
 0x124   :  { %626 = vmatmul.mubr.f32.vlgmr.msra.gmra.mrb[2].mxu1 %v354_v28 }
 0x1f4   :  { %v523_v29 = vpop.f32.mrb[4].mxu0 }
 0x1f5   :  { %v662_v30 = vpop.f32.mrb[5].mxu0 }
 0x1f7   :  { %v453_v31 = vpop.f32.mrb[2].mxu1 }
 0x1f8   :  { %v524_v33 = vadd.f32 %v523_v29, %v453_v31  ;;  %v627_v34 = vpop.f32.mrb[3].mxu1 }
 0x1fa   :  { %v534_v35 = vadd.f32 %v557_v32, %v524_v33 }
 0x1fc   :  { %v558_v36 = vmul.f32 -1.442695, %v534_v35 }
 0x1fe   :  { %777 = vpow2.f32 %v558_v36 }
 0x208   :  { %v778_v37 = vpop.eup %777 }
 0x209   :  { %v538_v0 = vadd.f32 1.0, %v778_v37 }
 0x20b   :  { %779 = vrcp.f32 %v538_v0 }
 0x215   :  { %v780_v38 = vpop.eup %779 }
 0x216   :  { %v541_v39 = vmul.f32 44.0, %v780_v38 }
 0x218   :  { %v542_v40 = vadd.f32 1.0, %v541_v39 }
 0x21a   :  { %544 = vst.msk [vmem:[%s996_s6] sm:$0xff] %vm543_vm2, %v542_v40 }
 0x21b   :  { %549 = vsyncpa [#allocation3], 1 }

</bundles_post_ra>
